<compile_context>
chip_gen: v6e
topology: v6e:2x2x1
jax: 0.10.0
libtpu: 0.0.40
codegen_flags: <defaults>
</compile_context>

<pallas_src>
import functools
import math

import jax
import jax.numpy as jnp
from jax.experimental import pallas as pl
from jax.experimental.pallas import tpu as pltpu


# -----------------------------------------------------------------------------
# Kernel
# -----------------------------------------------------------------------------
def _temp_conv1d_kernel(x_ref, w_ref, o_ref, *, t_period: int):
    """x_ref: (rows, C) input dtype; w_ref: (3, C) f32; o_ref: (rows, C).

    rows is a whole number of length-`t_period` sequences, so zero padding at
    sequence ends (and the roll wrap-around at block edges, since every block
    starts on a sequence boundary) is handled by masking rows whose
    in-sequence position is 0 / t_period-1.
    out[t] = w0*x[t-1] + w1*x[t] + w2*x[t+1], cast to x.dtype, + residual.
    """
    x_in = x_ref[...]                          # (rows, C) original dtype (residual)
    rows = x_in.shape[0]
    x = x_in.astype(jnp.float32)               # conv in f32 (matches .float())

    # Lane-narrow (rows, 1) in-sequence position; mask generation is ~C/128x
    # cheaper than a full-width iota and broadcasts inside the selects.
    t_idx = jax.lax.broadcasted_iota(jnp.int32, (rows, 1), 0) % t_period
    not_first = t_idx != 0                     # rows with a valid x[t-1]
    not_last = t_idx != (t_period - 1)         # rows with a valid x[t+1]

    w0 = w_ref[0:1, :]                         # (1, C) f32 -> sublane-broadcast
    w1 = w_ref[1:2, :]
    w2 = w_ref[2:3, :]

    # Accumulate term-by-term to limit live full-width f32 temporaries.
    y = x * w1
    y = y + jnp.where(not_first, pltpu.roll(x, shift=1, axis=0), 0.0) * w0
    y = y + jnp.where(not_last, pltpu.roll(x, shift=rows - 1, axis=0), 0.0) * w2

    o_ref[...] = y.astype(o_ref.dtype) + x_in


# -----------------------------------------------------------------------------
# Block planning
# -----------------------------------------------------------------------------
_SMALL_INPUT_BYTES = 2 * 1024 * 1024     # single-block fast path below this
_BLOCK_FLOOR_BYTES = 512 * 1024          # don't shrink blocks below this


def _hw_plan():
    """Return (target block bytes in input dtype, vmem_limit_bytes, #tensorcores)."""
    kind = ""
    try:
        kind = jax.devices()[0].device_kind.lower()
    except Exception:
        pass
    if "7" in kind:                      # v7x: 3.2 TB/s HBM, only 64 MiB VMEM, 2 TCs
        return 2 * 1024 * 1024, 48 * 1024 * 1024, 2
    if "v6" in kind or "6e" in kind:     # v6e: 128 MiB VMEM, 1.4 TB/s, 1 TC
        return 6 * 1024 * 1024, 96 * 1024 * 1024, 1
    if "v5" in kind:                     # v5e/v5p: 128 MiB VMEM, 1 TC
        return 4 * 1024 * 1024, 64 * 1024 * 1024, 1
    return 2 * 1024 * 1024, 48 * 1024 * 1024, 2   # unknown: be conservative


def _plan_blocks(B, T, C, itemsize):
    """Pick (batches per block, padded B, vmem_limit).

    Blocks always contain whole sequences (no halo) with a sublane-aligned row
    count; block bytes target the generation-specific HBM/VMEM sweet spot.
    """
    target_bytes, vmem_limit, num_tc = _hw_plan()
    total_bytes = B * T * C * itemsize

    if total_bytes <= _SMALL_INPUT_BYTES:
        # Tiny input: one full-array block, zero per-step grid overhead.
        return B, B, vmem_limit

    align = 16 if itemsize < 4 else 8          # 16-row packing for sub-4B dtypes
    m = align // math.gcd(T, align)            # nb multiple of m => rows % align == 0

    rows_target = max(1, target_bytes // (C * itemsize))
    nb = max(m, (rows_target // T // m) * m)
    # TODO(synk): a single sequence larger than the VMEM budget (huge T) would
    # need halo blocks along T; not needed for this module (T=8 by default).

    # Keep enough grid steps for DMA pipelining (and both TCs on 2-TC chips) as
    # long as blocks stay above the per-step-overhead floor.
    min_blocks = 4 if num_tc >= 2 else 3
    while (-(-B // nb) < min_blocks and nb > m
           and (nb // 2) * T * C * itemsize >= _BLOCK_FLOOR_BYTES):
        new_nb = max(m, ((nb // 2) // m) * m)
        if new_nb == nb:
            break
        nb = new_nb

    B_pad = -(-B // nb) * nb
    return nb, B_pad, vmem_limit


# -----------------------------------------------------------------------------
# Wrapper
# -----------------------------------------------------------------------------
def make_shift_weight(embed_dim: int) -> jnp.ndarray:
    """Deterministic Conv1d weight (embed_dim, 1, 3) flattened to (3, embed_dim)."""
    q = embed_dim // 4
    w = jnp.zeros((embed_dim, 3), dtype=jnp.float32)
    w = w.at[:q, 0].set(1.0)                     # first quarter: take x[t-1]
    w = w.at[q:q + embed_dim // 2, 1].set(1.0)   # middle half:  identity
    w = w.at[embed_dim - q:, 2].set(1.0)         # last quarter: take x[t+1]
    return w.T                                   # (3, embed_dim) — tap index leads


def temp_conv1d(x: jnp.ndarray, weight_3c: jnp.ndarray) -> jnp.ndarray:
    """x: (B, T, C); weight_3c: (3, C) float32. Returns (B, T, C) in x.dtype."""
    B, T, C = x.shape
    itemsize = jnp.dtype(x.dtype).itemsize

    # Lane-dense channels: pad C to a multiple of 128.  Padded channels carry
    # zero weights and zero inputs -> zero outputs, sliced off afterwards.
    C_pad = -(-C // 128) * 128
    nb, B_pad, vmem_limit = _plan_blocks(B, T, C_pad, itemsize)

    xw = x
    if C_pad != C or B_pad != B:
        xw = jnp.pad(x, ((0, B_pad - B), (0, 0), (0, C_pad - C)))
    w = weight_3c.astype(jnp.float32)
    if C_pad != C:
        w = jnp.pad(w, ((0, 0), (0, C_pad - C)))

    R_pad = B_pad * T
    rows_blk = nb * T
    grid = (R_pad // rows_blk,)
    x2 = xw.reshape(R_pad, C_pad)

    cost = pl.CostEstimate(
        flops=6 * R_pad * C_pad,                      # 3 mul + 2 add + residual
        transcendentals=0,
        bytes_accessed=2 * R_pad * C_pad * itemsize + 3 * C_pad * 4,
    )

    out2 = pl.pallas_call(
        functools.partial(_temp_conv1d_kernel, t_period=T),
        out_shape=jax.ShapeDtypeStruct((R_pad, C_pad), x.dtype),
        grid_spec=pltpu.PrefetchScalarGridSpec(
            num_scalar_prefetch=0,
            grid=grid,
            in_specs=[
                pl.BlockSpec((rows_blk, C_pad), lambda i: (i, 0)),
                pl.BlockSpec((3, C_pad), lambda i: (0, 0)),
            ],
            out_specs=pl.BlockSpec((rows_blk, C_pad), lambda i: (i, 0)),
        ),
        compiler_params=pltpu.CompilerParams(
            dimension_semantics=("parallel",),
            vmem_limit_bytes=vmem_limit,
        ),
        cost_estimate=cost,
    )(x2, w)

    out = out2.reshape(B_pad, T, C_pad)
    if C_pad != C or B_pad != B:
        out = out[:B, :, :C]
    return out


def temp_conv1d_ref(x: jnp.ndarray, weight_3c: jnp.ndarray) -> jnp.ndarray:
    """Pure-JAX reference of the PyTorch forward."""
    xf = x.astype(jnp.float32)
    zero = jnp.zeros_like(xf[:, :1, :])
    x_prev = jnp.concatenate([zero, xf[:, :-1, :]], axis=1)
    x_next = jnp.concatenate([xf[:, 1:, :], zero], axis=1)
    y = (x_prev * weight_3c[0][None, None, :]
         + xf * weight_3c[1][None, None, :]
         + x_next * weight_3c[2][None, None, :])
    return y.astype(x.dtype) + x


if __name__ == "__main__":
    # Small shapes consistent with the module defaults (T=8, embed_dim=512).
    B, T, C = 2, 8, 512

    key = jax.random.PRNGKey(0)
    x = jax.random.normal(key, (B, T, C), dtype=jnp.float32).astype(jnp.bfloat16)
    w = make_shift_weight(C)

    ref = temp_conv1d_ref(x, w)

    out = temp_conv1d(x, w)
    out = jax.block_until_ready(out)

    assert out.shape == ref.shape and out.dtype == ref.dtype
    assert jnp.allclose(out.astype(jnp.float32), ref.astype(jnp.float32),
                        atol=1e-2, rtol=1e-2)

    print("KERNEL_OK")
</pallas_src>

<mosaic_0001>
module attributes {stable_mosaic.version = 11 : i64} {
  func.func @_temp_conv1d_kernel(%arg0: i32, %arg1: memref<16x512xbf16, #tpu.memory_space<vmem>>, %arg2: memref<3x512xf32, #tpu.memory_space<vmem>>, %arg3: memref<16x512xbf16, #tpu.memory_space<vmem>>) attributes {dimension_semantics = [#tpu.dimension_semantics<parallel>], iteration_bounds = array<i64: 1>, scalar_prefetch = 0 : i64, scratch_operands = 0 : i64, tpu.core_type = #tpu.core_type<tc>, window_params = [{transform_indices = @transform_0, window_bounds = array<i64: 16, 512>}, {pipeline_mode = #tpu.pipeline_mode<synchronous>, transform_indices = @transform_1, window_bounds = array<i64: 3, 512>}, {transform_indices = @transform_2, window_bounds = array<i64: 16, 512>}]} {
    %c0 = arith.constant 0 : index
    %c0_0 = arith.constant 0 : index
    %0 = vector.load %arg1[%c0, %c0_0] : memref<16x512xbf16, #tpu.memory_space<vmem>>, vector<16x512xbf16>
    %1 = arith.extf %0 : vector<16x512xbf16> to vector<16x512xf32>
    %2 = tpu.iota {dimensions = array<i32: 0>} : vector<16x1xi32>
    %c8_i32 = arith.constant 8 : i32
    %c0_i32 = arith.constant 0 : i32
    %3 = arith.cmpi eq, %c8_i32, %c0_i32 : i32
    %c1_i32 = arith.constant 1 : i32
    %4 = arith.select %3, %c1_i32, %c8_i32 : i32
    %5 = vector.broadcast %4 : i32 to vector<16x1xi32>
    %6 = arith.remsi %2, %5 : vector<16x1xi32>
    %c0_i32_1 = arith.constant 0 : i32
    %7 = vector.broadcast %c0_i32_1 : i32 to vector<16x1xi32>
    %8 = arith.cmpi ne, %6, %7 : vector<16x1xi32>
    %c0_i32_2 = arith.constant 0 : i32
    %9 = vector.broadcast %c0_i32_2 : i32 to vector<16x1xi32>
    %10 = arith.cmpi slt, %6, %9 : vector<16x1xi32>
    %c0_i32_3 = arith.constant 0 : i32
    %11 = arith.cmpi slt, %4, %c0_i32_3 : i32
    %12 = vector.broadcast %11 : i1 to vector<16x1xi1>
    %13 = vector.broadcast %12 : vector<16x1xi1> to vector<16x1xi1>
    %14 = arith.xori %10, %13 : vector<16x1xi1>
    %15 = arith.andi %14, %8 : vector<16x1xi1>
    %16 = vector.broadcast %4 : i32 to vector<16x1xi32>
    %17 = arith.addi %6, %16 : vector<16x1xi32>
    %18 = arith.select %15, %17, %6 : vector<16x1xi1>, vector<16x1xi32>
    %c0_i32_4 = arith.constant 0 : i32
    %19 = vector.broadcast %c0_i32_4 : i32 to vector<16x1xi32>
    %20 = arith.cmpi ne, %18, %19 : vector<16x1xi32>
    %c7_i32 = arith.constant 7 : i32
    %21 = vector.broadcast %c7_i32 : i32 to vector<16x1xi32>
    %22 = arith.cmpi ne, %18, %21 : vector<16x1xi32>
    %c0_5 = arith.constant 0 : index
    %c0_6 = arith.constant 0 : index
    %23 = vector.load %arg2[%c0_5, %c0_6] : memref<3x512xf32, #tpu.memory_space<vmem>>, vector<1x512xf32>
    %c1 = arith.constant 1 : index
    %c0_7 = arith.constant 0 : index
    %24 = vector.load %arg2[%c1, %c0_7] : memref<3x512xf32, #tpu.memory_space<vmem>>, vector<1x512xf32>
    %c2 = arith.constant 2 : index
    %c0_8 = arith.constant 0 : index
    %25 = vector.load %arg2[%c2, %c0_8] : memref<3x512xf32, #tpu.memory_space<vmem>>, vector<1x512xf32>
    %26 = vector.broadcast %24 : vector<1x512xf32> to vector<16x512xf32>
    %27 = arith.mulf %1, %26 : vector<16x512xf32>
    %c1_i32_9 = arith.constant 1 : i32
    %28 = tpu.dynamic_rotate %1 by %c1_i32_9 dim 0 : vector<16x512xf32>, i32 -> vector<16x512xf32>
    %cst = arith.constant 0.000000e+00 : f32
    %29 = vector.shape_cast %20 : vector<16x1xi1> to vector<16x1xi1>
    %30 = vector.broadcast %29 : vector<16x1xi1> to vector<16x512xi1>
    %31 = vector.broadcast %cst : f32 to vector<16x512xf32>
    %32 = arith.select %30, %28, %31 : vector<16x512xi1>, vector<16x512xf32>
    %33 = vector.broadcast %23 : vector<1x512xf32> to vector<16x512xf32>
    %34 = arith.mulf %32, %33 : vector<16x512xf32>
    %35 = arith.addf %27, %34 : vector<16x512xf32>
    %c15_i32 = arith.constant 15 : i32
    %36 = tpu.dynamic_rotate %1 by %c15_i32 dim 0 : vector<16x512xf32>, i32 -> vector<16x512xf32>
    %cst_10 = arith.constant 0.000000e+00 : f32
    %37 = vector.shape_cast %22 : vector<16x1xi1> to vector<16x1xi1>
    %38 = vector.broadcast %37 : vector<16x1xi1> to vector<16x512xi1>
    %39 = vector.broadcast %cst_10 : f32 to vector<16x512xf32>
    %40 = arith.select %38, %36, %39 : vector<16x512xi1>, vector<16x512xf32>
    %41 = vector.broadcast %25 : vector<1x512xf32> to vector<16x512xf32>
    %42 = arith.mulf %40, %41 : vector<16x512xf32>
    %43 = arith.addf %35, %42 : vector<16x512xf32>
    %44 = arith.truncf %43 : vector<16x512xf32> to vector<16x512xbf16>
    %45 = arith.addf %44, %0 : vector<16x512xbf16>
    %c0_11 = arith.constant 0 : index
    %c0_12 = arith.constant 0 : index
    %46 = vector.load %arg3[%c0_11, %c0_12] : memref<16x512xbf16, #tpu.memory_space<vmem>>, vector<16x512xbf16>
    tpu.vector_store %arg3[%c0_11, %c0_12], %45 {strides = array<i32>} : memref<16x512xbf16, #tpu.memory_space<vmem>>, vector<16x512xbf16>,
    return
  }
  func.func @transform_0(%arg0: i32) -> (i32, i32) {
    %c0_i32 = arith.constant 0 : i32
    %c0_i32_0 = arith.constant 0 : i32
    return %arg0, %c0_i32 : i32, i32
  }
  func.func @transform_1(%arg0: i32) -> (i32, i32) {
    %c0_i32 = arith.constant 0 : i32
    %c0_i32_0 = arith.constant 0 : i32
    %c0_i32_1 = arith.constant 0 : i32
    return %c0_i32, %c0_i32_0 : i32, i32
  }
  func.func @transform_2(%arg0: i32) -> (i32, i32) {
    %c0_i32 = arith.constant 0 : i32
    %c0_i32_0 = arith.constant 0 : i32
    return %arg0, %c0_i32 : i32, i32
  }
}

</mosaic_0001>

<bundles_post_ra>
// kernel: tpu_custom_call.1
= control target key start
LH: loop header
LB: loop body
LE: loop exit
PB: predicated region body
PF: predicated region fallthrough
CT: control target
= control target key end

     0   :  { %7 = vsyncpa [#allocation3], 0  ;;  %s577_s0 = inlined_call_operand.hbm [shape: bf16[16,512], index: 0, kind: input, shape index: {}]   ;;  %s578_s1 = inlined_call_operand.hbm [shape: f32[3,512], index: 1, kind: input, shape index: {}]   ;;  %s579_s2 = inlined_call_operand.hbm [shape: bf16[16,512], index: 2, kind: output, shape index: {}]  }
   0x1   :  { %8 = vsyncpa [#allocation6], 0 }
   0x2   :  { %9 = vsyncpa [#allocation4], 0  ;;  %s400_s9 = smov [#allocation2]  }
   0x3   :  { %s15_s10 = sshll.u32 %s400_s9, 4  ;;  %s16_s10 = int_to_ptr.vmem [resolvable:$true] %s15_s10 }
   0x4   :  { %s342_s11 = scalar_lea.vmem %s16_s10, 512  ;;  %p347_p1 = scmp.lt.s32.totalorder %s16_s10, %s16_s10 }
   0x5   :  { %p343_p0 = scmp.ne.s32.totalorder %s16_s10, %s342_s11  ;;  %p348_p2 = scmp.lt.s32.totalorder %s342_s11, %s342_s11 }
   0x7   :  { %p349_p3 = por %p348_p2, %p347_p1 }
   0x9   :  { %p350_p4 = pnand %p349_p3, %p343_p0 }
   0xb   :  { %353 = shalt.err (!%p350_p4)
}
   0xc   :  { %s401_s12 = smov 256   ;;  %s402_s13 = smov 16  }
   0xd   :  { %21 = dma.hbm_to_vmem [thread:$0]  %s577_s0, 512, %s16_s10, [#allocation3], %s401_s12, %s401_s12, %s402_s13  }
   0xe   :  { %s403_s16 = smov [#allocation5]  }
   0xf   :  { %s28_s17 = sshll.u32 %s403_s16, 4  ;;  %s29_s17 = int_to_ptr.vmem [resolvable:$true] %s28_s17 }
  0x10   :  { %s362_s18 = scalar_lea.vmem %s29_s17, 256  ;;  %p367_p6 = scmp.lt.s32.totalorder %s29_s17, %s29_s17 }
  0x11   :  { %p363_p5 = scmp.ne.s32.totalorder %s29_s17, %s362_s18  ;;  %p368_p7 = scmp.lt.s32.totalorder %s362_s18, %s362_s18 }
  0x13   :  { %p369_p8 = por %p368_p7, %p367_p6 }
  0x15   :  { %p370_p9 = pnand %p369_p8, %p363_p5 }
  0x17   :  { %373 = shalt.err (!%p370_p9)
}
  0x18   :  { %31 = dma.hbm_to_vmem [thread:$0]  %s578_s1, 256, %s29_s17, [#allocation6]  }
  0x19   :  { %394 = dma.done.wait [#allocation3], 512  }
  0x1a   :  { %395 = vsyncadd [#allocation3], 4294966784 }
  0x1b   :  { %396 = dma.done.wait [#allocation6], 256  }
  0x1c   :  { %397 = vsyncadd [#allocation6], 4294967040  ;;  %v50_v0 = vlaneseq  ;;  %v436_v7 = vld [vmem:[#allocation2] sm:$0xff]  ;;  %v438_v8 = vld [vmem:[#allocation2 + $0x10] sm:$0xff]  ;;  %s404_s0 = smov [#allocation7]  }
  0x1d   :  { %v42_v12 = vunpack.c.l.bf16 %v436_v7  ;;  %v43_v13 = vunpack.c.h.bf16 %v436_v7  ;;  %v46_v14 = vunpack.c.l.bf16 %v438_v8  ;;  %v47_v15 = vunpack.c.h.bf16 %v438_v8  ;;  %v459_v17 = vld [vmem:[#allocation5 + $0x1] ss:$4 sm:$0xf]  ;;  %v471_v26 = vld [vmem:[#allocation5] ss:$4 sm:$0xf] }
  0x1e   :  { %v429_v1 = vshrl.u32 %v50_v0, 7  ;;  %v473_v31 = vld [vmem:[#allocation5 + $0x2] ss:$4 sm:$0xf]  ;;  %s304_s1 = sshll.u32 %s404_s0, 4  ;;  %s305_s1 = int_to_ptr.vmem [resolvable:$true] %s304_s1 }
  0x1f   :  { %v115_v22 = vrot.slane %v42_v12, 7  ;;  %v116_v23 = vrot.slane %v43_v13, 7  ;;  %v119_v24 = vrot.slane %v46_v14, 7  ;;  %v120_v25 = vrot.slane %v47_v15, 7  ;;  %v503_v60 = vld [vmem:[#allocation2 + $0x8] sm:$0xff]  ;;  %s374_s21 = scalar_lea.vmem %s305_s1, 512  ;;  %p379_p11 = scmp.lt.s32.totalorder %s305_s1, %s305_s1 }
  0x20   :  { %v52_v2 = vadd.s32 8, %v429_v1  ;;  %v57_v3 = vand.u32 7, %v429_v1  ;;  %v89_v4 = vsub.s32 0, %v429_v1  ;;  %v93_v5 = vsub.s32 1, %v429_v1  ;;  %p375_p10 = scmp.ne.s32.totalorder %s305_s1, %s374_s21  ;;  %p380_p12 = scmp.lt.s32.totalorder %s374_s21, %s374_s21 }
  0x21   :  { %vm123_vm0 = vcmp.lt.s32.totalorder %v429_v1, 1  ;;  %vm189_vm2 = vcmp.lt.s32.totalorder %v429_v1, 7  ;;  %v446_v10 = vsub.s32 2, %v429_v1  ;;  %v449_v11 = vsub.s32 3, %v429_v1 }
  0x22   :  { %v64_v6 = vand.u32 7, %v52_v2  ;;  %vm440_vm1 = vcmp.ne.s32.totalorder %v57_v3, 0  ;;  %vm455_vm3 = vcmp.ne.s32.totalorder %v57_v3, 7  ;;  %v90_v20 = vrot.slane %v459_v17, %v89_v4  ;;  %p381_p13 = por %p380_p12, %p379_p11 }
  0x23   :  { %v94_v21 = vrot.slane %v459_v17, %v93_v5  ;;  %v124_v32 = vsel %vm123_vm0, %v115_v22, %v119_v24  ;;  %v125_v33 = vsel %vm123_vm0, %v116_v23, %v120_v25  ;;  %v128_v34 = vsel %vm123_vm0, %v119_v24, %v115_v22 }
  0x24   :  { %vm461_vm4 = vcmp.ne.s32.totalorder %v64_v6, 0  ;;  %vm465_vm5 = vcmp.ne.s32.totalorder %v64_v6, 7  ;;  %v107_v27 = vmul.f32 %v90_v20, %v42_v12  ;;  %v111_v29 = vmul.f32 %v90_v20, %v46_v14  ;;  %v513_v6 = vld [vmem:[#allocation2 + $0x18] sm:$0xff]  ;;  %p382_p0 = pnand %p381_p13, %p375_p10 }
  0x25   :  { %v108_v28 = vmul.f32 %v94_v21, %v43_v13  ;;  %v112_v30 = vmul.f32 %v94_v21, %v47_v15  ;;  %v129_v35 = vsel %vm123_vm0, %v120_v25, %v116_v23  ;;  %v136_v36 = vsel %vm440_vm1, %v128_v34, 0.0 }
  0x26   :  { %v137_v37 = vsel %vm440_vm1, %v129_v35, 0.0  ;;  %v140_v38 = vsel %vm461_vm4, %v124_v32, 0.0  ;;  %v141_v39 = vsel %vm461_vm4, %v125_v33, 0.0  ;;  %v148_v40 = vrot.slane %v471_v26, %v89_v4 }
  0x27   :  { %v152_v41 = vrot.slane %v471_v26, %v93_v5  ;;  %v181_v42 = vrot.slane %v42_v12, 1  ;;  %v182_v43 = vrot.slane %v43_v13, 1  ;;  %v185_v44 = vrot.slane %v46_v14, 1 }
  0x28   :  { %v186_v45 = vrot.slane %v47_v15, 1  ;;  %v214_v46 = vrot.slane %v473_v31, %v89_v4  ;;  %v218_v47 = vrot.slane %v473_v31, %v93_v5  ;;  %v165_v48 = vmul.f32 %v148_v40, %v136_v36 }
  0x29   :  { %v166_v49 = vmul.f32 %v152_v41, %v137_v37  ;;  %v169_v50 = vmul.f32 %v148_v40, %v140_v38  ;;  %v170_v51 = vmul.f32 %v152_v41, %v141_v39  ;;  %v190_v52 = vsel %vm189_vm2, %v181_v42, %v185_v44 }
  0x2a   :  { %v191_v53 = vsel %vm189_vm2, %v182_v43, %v186_v45  ;;  %v194_v54 = vsel %vm189_vm2, %v185_v44, %v181_v42  ;;  %v195_v55 = vsel %vm189_vm2, %v186_v45, %v182_v43  ;;  %v173_v56 = vadd.f32 %v165_v48, %v107_v27 }
  0x2b   :  { %v174_v57 = vadd.f32 %v166_v49, %v108_v28  ;;  %v177_v58 = vadd.f32 %v169_v50, %v111_v29  ;;  %v178_v59 = vadd.f32 %v170_v51, %v112_v30  ;;  %v202_v61 = vsel %vm455_vm3, %v190_v52, 0.0 }
  0x2c   :  { %v203_v62 = vsel %vm455_vm3, %v191_v53, 0.0  ;;  %v206_v63 = vsel %vm465_vm5, %v194_v54, 0.0  ;;  %v207_v0 = vsel %vm465_vm5, %v195_v55, 0.0  ;;  %v231_v2 = vmul.f32 %v214_v46, %v202_v61 }
  0x2d   :  { %v232_v3 = vmul.f32 %v218_v47, %v203_v62  ;;  %v235_v4 = vmul.f32 %v214_v46, %v206_v63  ;;  %v236_v5 = vmul.f32 %v218_v47, %v207_v0  ;;  %v317_v12 = vcombine.low %v436_v7, %v438_v8 }
  0x2e   :  { %v318_v13 = vcombine.high %v436_v7, %v438_v8  ;;  %v44_v14 = vunpack.c.l.bf16 %v503_v60  ;;  %v45_v15 = vunpack.c.h.bf16 %v503_v60  ;;  %v239_v20 = vadd.f32 %v231_v2, %v173_v56 }
  0x2f   :  { %v240_v21 = vadd.f32 %v232_v3, %v174_v57  ;;  %v243_v22 = vadd.f32 %v235_v4, %v177_v58  ;;  %v244_v23 = vadd.f32 %v236_v5, %v178_v59  ;;  %v48_v24 = vunpack.c.l.bf16 %v513_v6 }
  0x30   :  { %v49_v25 = vunpack.c.h.bf16 %v513_v6  ;;  %v98_v27 = vrot.slane %v459_v17, %v446_v10  ;;  %v102_v28 = vrot.slane %v459_v17, %v449_v11  ;;  %v117_v8 = vrot.slane %v44_v14, 7 }
  0x31   :  { %v247_v29 = vpack.c.bf16 %v243_v22, %v239_v20  ;;  %v248_v7 = vpack.c.bf16 %v244_v23, %v240_v21  ;;  %v118_v30 = vrot.slane %v45_v15, 7  ;;  %v121_v38 = vrot.slane %v48_v24, 7 }
  0x32   :  { %v109_v32 = vmul.f32 %v98_v27, %v44_v14  ;;  %v110_v33 = vmul.f32 %v102_v28, %v45_v15  ;;  %v113_v34 = vmul.f32 %v98_v27, %v48_v24  ;;  %v114_v35 = vmul.f32 %v102_v28, %v49_v25 }
  0x33   :  { %v271_v36 = vadd.bf16 %v317_v12, %v247_v29  ;;  %v272_v37 = vadd.bf16 %v318_v13, %v248_v7  ;;  %v122_v39 = vrot.slane %v49_v25, 7  ;;  %v156_v40 = vrot.slane %v471_v26, %v446_v10 }
  0x34   :  { %v160_v41 = vrot.slane %v471_v26, %v449_v11  ;;  %v183_v42 = vrot.slane %v44_v14, 1  ;;  %v184_v17 = vrot.slane %v45_v15, 1  ;;  %v126_v44 = vsel %vm123_vm0, %v117_v8, %v121_v38 }
  0x35   :  { %v321_v43 = vcombine.low %v271_v36, %v272_v37  ;;  %v127_v45 = vsel %vm123_vm0, %v118_v30, %v122_v39  ;;  %v130_v46 = vsel %vm123_vm0, %v121_v38, %v117_v8  ;;  %v131_v47 = vsel %vm123_vm0, %v122_v39, %v118_v30 }
  0x36   :  { %v138_v48 = vsel %vm440_vm1, %v130_v46, 0.0  ;;  %v142_v26 = vsel %vm461_vm4, %v126_v44, 0.0  ;;  %v143_v49 = vsel %vm461_vm4, %v127_v45, 0.0  ;;  %v139_v50 = vsel %vm440_vm1, %v131_v47, 0.0 }
  0x37   :  { %295 = vst [vmem:[#allocation7] sm:$0xff] %v321_v43  ;;  %v167_v51 = vmul.f32 %v156_v40, %v138_v48  ;;  %v171_v52 = vmul.f32 %v156_v40, %v142_v26  ;;  %v172_v53 = vmul.f32 %v160_v41, %v143_v49  ;;  %v168_v54 = vmul.f32 %v160_v41, %v139_v50 }
  0x38   :  { %v187_v55 = vrot.slane %v48_v24, 1  ;;  %v188_v56 = vrot.slane %v49_v25, 1  ;;  %v222_v57 = vrot.slane %v473_v31, %v446_v10  ;;  %v226_v18 = vrot.slane %v473_v31, %v449_v11 }
  0x39   :  { %v175_v58 = vadd.f32 %v167_v51, %v109_v32  ;;  %v179_v59 = vadd.f32 %v171_v52, %v113_v34  ;;  %v180_v61 = vadd.f32 %v172_v53, %v114_v35  ;;  %v176_v62 = vadd.f32 %v168_v54, %v110_v33 }
  0x3a   :  { %v192_v9 = vsel %vm189_vm2, %v183_v42, %v187_v55  ;;  %v193_v63 = vsel %vm189_vm2, %v184_v17, %v188_v56  ;;  %v196_v0 = vsel %vm189_vm2, %v187_v55, %v183_v42  ;;  %v197_v2 = vsel %vm189_vm2, %v188_v56, %v184_v17 }
  0x3b   :  { %v204_v10 = vsel %vm455_vm3, %v192_v9, 0.0  ;;  %v205_v3 = vsel %vm455_vm3, %v193_v63, 0.0  ;;  %v208_v11 = vsel %vm465_vm5, %v196_v0, 0.0  ;;  %v209_v31 = vsel %vm465_vm5, %v197_v2, 0.0 }
  0x3c   :  { %v233_v4 = vmul.f32 %v222_v57, %v204_v10  ;;  %v234_v5 = vmul.f32 %v226_v18, %v205_v3  ;;  %v237_v12 = vmul.f32 %v222_v57, %v208_v11  ;;  %v238_v13 = vmul.f32 %v226_v18, %v209_v31 }
  0x3d   :  { %v323_v14 = vcombine.high %v271_v36, %v272_v37  ;;  %v319_v21 = vcombine.low %v503_v60, %v513_v6  ;;  %v320_v16 = vcombine.high %v503_v60, %v513_v6 }
  0x3e   :  { %v241_v15 = vadd.f32 %v233_v4, %v175_v58  ;;  %v242_v1 = vadd.f32 %v234_v5, %v176_v62  ;;  %v245_v20 = vadd.f32 %v237_v12, %v179_v59  ;;  %v246_v22 = vadd.f32 %v238_v13, %v180_v61 }
  0x3f   :  { %297 = vst [vmem:[#allocation7 + $0x10] sm:$0xff] %v323_v14 }
  0x40   :  { %v249_v23 = vpack.c.bf16 %v245_v20, %v241_v15  ;;  %v250_v24 = vpack.c.bf16 %v246_v22, %v242_v1 }
  0x42   :  { %v273_v19 = vadd.bf16 %v319_v21, %v249_v23  ;;  %v274_v25 = vadd.bf16 %v320_v16, %v250_v24 }
  0x44   :  { %v322_v27 = vcombine.low %v273_v19, %v274_v25  ;;  %v324_v28 = vcombine.high %v273_v19, %v274_v25 }
  0x46   :  { %296 = vst [vmem:[#allocation7 + $0x8] sm:$0xff] %v322_v27  ;;  %298 = vst [vmem:[#allocation7 + $0x18] sm:$0xff] %v324_v28 }
  0x47   :  { %385 = shalt.err (!%p382_p0)
}
  0x48   :  { %310 = dma.vmem_to_hbm [thread:$0]  %s305_s1, 512, %s579_s2, [#allocation4], %s401_s12, %s401_s12, %s402_s13  }
  0x49   :  { %398 = dma.done.wait [#allocation4], 512  }
  0x4a   :  { %399 = vsyncadd [#allocation4], 4294966784 }
  0x4b   :  { %314 = vsyncpa [#allocation3], 1 }
  0x4c   :  { %315 = vsyncpa [#allocation6], 1 }
  0x4d   :  { %316 = vsyncpa [#allocation4], 1 }

</bundles_post_ra>
